<compile_context>
chip_gen: v7x
topology: tpu7x:2x2x1
jax: 0.10.0
libtpu: 0.0.40
codegen_flags: <defaults>
</compile_context>

<pallas_src>
import jax
import jax.numpy as jnp
from jax.experimental import pallas as pl
from jax.experimental.pallas import tpu as pltpu


# ----------------------------------------------------------------------------
# Fused kernel: semantic_trans + feature_trans + outer mul + tanh + joint_trans.
# Grid tiles the batch dimension N; C and D are kept whole per tile.
# ----------------------------------------------------------------------------
def _semantic_decouple_kernel(sf_ref, wsT_ref, gf_ref, wfT_ref, wjT_ref, bj_ref,
                              out_ref):
    bn = gf_ref.shape[0]
    c = sf_ref.shape[0]

    # semantic_trans: (C, k) @ (k, D) -> (C, D).  Tiny; recomputed per tile.
    s = jnp.dot(sf_ref[...], wsT_ref[...], preferred_element_type=jnp.float32)

    # feature_trans on this batch tile: (bn, d) @ (d, D) -> (bn, D)
    g = jnp.dot(gf_ref[...], wfT_ref[...], preferred_element_type=jnp.float32)

    # Build the joint feature directly as a dense 2-D (bn*C, D) block.
    # Row ordering matches the row-major reshape(n, c, D): row i*C + j pairs
    # global row i with semantic row j.
    g_rep = jnp.repeat(g, c, axis=0)      # (bn*C, D): each g-row repeated C times
    s_tile = jnp.tile(s, (bn, 1))         # (bn*C, D): semantic rows cycle fastest
    joint2d = jnp.tanh(g_rep * s_tile)    # tanh rides the EUP slot (free-ish)

    # joint_trans: (bn*C, D) @ (D, D) + bias
    out = jnp.dot(joint2d, wjT_ref[...], preferred_element_type=jnp.float32)
    out_ref[...] = (out + bj_ref[...]).astype(out_ref.dtype)   # bj_ref is (1, D)


# ----------------------------------------------------------------------------
# Block-size heuristic: one grid step on 1-TC chips (v5e/v6e), two parallel
# steps on 2-TC chips (v7x) so both TensorCores get a tile.
# ----------------------------------------------------------------------------
def _pick_block_n(n, c):
    two_tc = False
    try:
        kind = jax.devices()[0].device_kind.lower()
        two_tc = "v7" in kind
    except Exception:
        pass
    if two_tc and n % 2 == 0 and ((n // 2) * c) % 8 == 0:
        return n // 2
    return n


# ----------------------------------------------------------------------------
# Wrapper
# ----------------------------------------------------------------------------
def semantic_decouple(global_feature, semantic_feature, wf, ws, wj, bj, *,
                      block_n=None):
    """
    global_feature:   (N, d)  float32
    semantic_feature: (C, k)  float32
    wf: (D, d)   feature_trans.weight   (torch Linear layout: out x in)
    ws: (D, k)   semantic_trans.weight
    wj: (D, D)   joint_trans.weight
    bj: (D,)     joint_trans.bias
    returns: (N, C, D)
    """
    n, d = global_feature.shape
    c, k = semantic_feature.shape
    dim = wf.shape[0]

    if block_n is None:
        block_n = _pick_block_n(n, c)
    assert n % block_n == 0, "N must be divisible by block_n"

    # Pre-transpose weights (glue) so the kernel does straight row-major matmuls.
    wfT = wf.T                  # (d, D)
    wsT = ws.T                  # (k, D)
    wjT = wj.T                  # (D, D)
    bj2 = bj.reshape(1, dim)    # (1, D)

    # TODO(synk): if intermediary_dim grows to ~1-2K, add a second grid axis
    # tiling the columns of WjT / the output D (and set vmem_limit_bytes) so the
    # resident (D, D) block + double-buffering fits v7x's smaller VMEM.
    out2d = pl.pallas_call(
        _semantic_decouple_kernel,
        out_shape=jax.ShapeDtypeStruct((n * c, dim), jnp.float32),
        grid=(n // block_n,),
        in_specs=[
            pl.BlockSpec((c, k), lambda i: (0, 0)),           # semantic_feature
            pl.BlockSpec((k, dim), lambda i: (0, 0)),         # Ws^T   (resident)
            pl.BlockSpec((block_n, d), lambda i: (i, 0)),     # global_feature tile
            pl.BlockSpec((d, dim), lambda i: (0, 0)),         # Wf^T   (resident)
            pl.BlockSpec((dim, dim), lambda i: (0, 0)),       # Wj^T   (resident)
            pl.BlockSpec((1, dim), lambda i: (0, 0)),         # bias
        ],
        out_specs=pl.BlockSpec((block_n * c, dim), lambda i: (i, 0)),
        compiler_params=pltpu.CompilerParams(
            dimension_semantics=("parallel",),
        ),
    )(semantic_feature, wsT, global_feature, wfT, wjT, bj2)

    # Free metadata reshape in XLA: (N*C, D) -> (N, C, D).
    return out2d.reshape(n, c, dim)


# ----------------------------------------------------------------------------
# Pure-JAX reference (mirrors the PyTorch forward exactly)
# ----------------------------------------------------------------------------
def semantic_decouple_ref(global_feature, semantic_feature, wf, ws, wj, bj):
    n, _ = global_feature.shape
    c, _ = semantic_feature.shape
    g = global_feature @ wf.T                       # (N, D)
    s = semantic_feature @ ws.T                     # (C, D)
    joint = g[:, None, :] * s[None, :, :]           # (N, C, D)
    joint = jnp.tanh(joint).reshape(n * c, -1)
    out = joint @ wj.T + bj
    return out.reshape(n, c, -1)


if __name__ == "__main__":
    # Small, module-consistent shapes:
    #   N (batch) = 16, feature_dim d = 32, num_classes C = 4,
    #   semantic_dim k = 16, intermediary_dim D = 128.
    N, D_FEAT, C, K_SEM, D_INT = 16, 32, 4, 16, 128

    key = jax.random.PRNGKey(0)
    k_gf, k_sf, k_wf, k_ws, k_wj, k_bj = jax.random.split(key, 6)

    global_feature = jax.random.normal(k_gf, (N, D_FEAT), dtype=jnp.float32)
    semantic_feature = jax.random.normal(k_sf, (C, K_SEM), dtype=jnp.float32)

    # Deterministic parameter init (torch Linear weight layout: out x in).
    wf = jax.random.normal(k_wf, (D_INT, D_FEAT), dtype=jnp.float32) * 0.05
    ws = jax.random.normal(k_ws, (D_INT, K_SEM), dtype=jnp.float32) * 0.05
    wj = jax.random.normal(k_wj, (D_INT, D_INT), dtype=jnp.float32) * 0.05
    bj = jax.random.normal(k_bj, (D_INT,), dtype=jnp.float32) * 0.05

    out = semantic_decouple(global_feature, semantic_feature, wf, ws, wj, bj)
    out = jax.block_until_ready(out)

    ref = semantic_decouple_ref(global_feature, semantic_feature, wf, ws, wj, bj)
    assert out.shape == (N, C, D_INT), out.shape
    assert jnp.allclose(out, ref, atol=1e-4, rtol=1e-4), float(
        jnp.max(jnp.abs(out - ref)))

    print("KERNEL_OK")
</pallas_src>

<mosaic_0001>
module attributes {stable_mosaic.version = 11 : i64} {
  func.func @_semantic_decouple_kernel(%arg0: i32, %arg1: memref<4x16xf32, #tpu.memory_space<vmem>>, %arg2: memref<16x128xf32, #tpu.memory_space<vmem>>, %arg3: memref<16x32xf32, #tpu.memory_space<vmem>>, %arg4: memref<32x128xf32, #tpu.memory_space<vmem>>, %arg5: memref<128x128xf32, #tpu.memory_space<vmem>>, %arg6: memref<1x128xf32, #tpu.memory_space<vmem>>, %arg7: memref<64x128xf32, #tpu.memory_space<vmem>>) attributes {dimension_semantics = [#tpu.dimension_semantics<parallel>], iteration_bounds = array<i64: 1>, scalar_prefetch = 0 : i64, scratch_operands = 0 : i64, tpu.core_type = #tpu.core_type<tc>, window_params = [{pipeline_mode = #tpu.pipeline_mode<synchronous>, transform_indices = @transform_0, window_bounds = array<i64: 4, 16>}, {pipeline_mode = #tpu.pipeline_mode<synchronous>, transform_indices = @transform_1, window_bounds = array<i64: 16, 128>}, {transform_indices = @transform_2, window_bounds = array<i64: 16, 32>}, {pipeline_mode = #tpu.pipeline_mode<synchronous>, transform_indices = @transform_3, window_bounds = array<i64: 32, 128>}, {pipeline_mode = #tpu.pipeline_mode<synchronous>, transform_indices = @transform_4, window_bounds = array<i64: 128, 128>}, {pipeline_mode = #tpu.pipeline_mode<synchronous>, transform_indices = @transform_5, window_bounds = array<i64: 1, 128>}, {transform_indices = @transform_6, window_bounds = array<i64: 64, 128>}]} {
    %c0 = arith.constant 0 : index
    %c0_0 = arith.constant 0 : index
    %0 = vector.load %arg1[%c0, %c0_0] : memref<4x16xf32, #tpu.memory_space<vmem>>, vector<4x16xf32>
    %c0_1 = arith.constant 0 : index
    %c0_2 = arith.constant 0 : index
    %1 = vector.load %arg2[%c0_1, %c0_2] : memref<16x128xf32, #tpu.memory_space<vmem>>, vector<16x128xf32>
    %cst = arith.constant dense<0.000000e+00> : vector<4x128xf32>
    %2 = tpu.matmul %0, %1, %cst {dimension_numbers = #tpu.dot_dimension_numbers<[1], [0], [0], [1], [0, 0, 1, 1], [], []>} : vector<4x16xf32>, vector<16x128xf32>, vector<4x128xf32> -> vector<4x128xf32>
    %c0_3 = arith.constant 0 : index
    %c0_4 = arith.constant 0 : index
    %3 = vector.load %arg3[%c0_3, %c0_4] : memref<16x32xf32, #tpu.memory_space<vmem>>, vector<16x32xf32>
    %c0_5 = arith.constant 0 : index
    %c0_6 = arith.constant 0 : index
    %4 = vector.load %arg4[%c0_5, %c0_6] : memref<32x128xf32, #tpu.memory_space<vmem>>, vector<32x128xf32>
    %cst_7 = arith.constant dense<0.000000e+00> : vector<16x128xf32>
    %5 = tpu.matmul %3, %4, %cst_7 {dimension_numbers = #tpu.dot_dimension_numbers<[1], [0], [0], [1], [0, 0, 1, 1], [], []>} : vector<16x32xf32>, vector<32x128xf32>, vector<16x128xf32> -> vector<16x128xf32>
    %6 = vector.shape_cast %5 : vector<16x128xf32> to vector<16x1x128xf32>
    %7 = vector.broadcast %6 : vector<16x1x128xf32> to vector<16x4x128xf32>
    %8 = vector.shape_cast %7 : vector<16x4x128xf32> to vector<64x128xf32>
    %9 = tpu.concatenate %2, %2, %2, %2, %2, %2, %2, %2, %2, %2, %2, %2, %2, %2, %2, %2 in 0 : vector<4x128xf32>, vector<4x128xf32>, vector<4x128xf32>, vector<4x128xf32>, vector<4x128xf32>, vector<4x128xf32>, vector<4x128xf32>, vector<4x128xf32>, vector<4x128xf32>, vector<4x128xf32>, vector<4x128xf32>, vector<4x128xf32>, vector<4x128xf32>, vector<4x128xf32>, vector<4x128xf32>, vector<4x128xf32> -> vector<64x128xf32>
    %10 = arith.mulf %8, %9 : vector<64x128xf32>
    %11 = math.tanh %10 : vector<64x128xf32>
    %c0_8 = arith.constant 0 : index
    %c0_9 = arith.constant 0 : index
    %12 = vector.load %arg5[%c0_8, %c0_9] : memref<128x128xf32, #tpu.memory_space<vmem>>, vector<128x128xf32>
    %cst_10 = arith.constant dense<0.000000e+00> : vector<64x128xf32>
    %13 = tpu.matmul %11, %12, %cst_10 {dimension_numbers = #tpu.dot_dimension_numbers<[1], [0], [0], [1], [0, 0, 1, 1], [], []>} : vector<64x128xf32>, vector<128x128xf32>, vector<64x128xf32> -> vector<64x128xf32>
    %c0_11 = arith.constant 0 : index
    %c0_12 = arith.constant 0 : index
    %14 = vector.load %arg6[%c0_11, %c0_12] : memref<1x128xf32, #tpu.memory_space<vmem>>, vector<1x128xf32>
    %15 = vector.broadcast %14 : vector<1x128xf32> to vector<64x128xf32>
    %16 = arith.addf %13, %15 : vector<64x128xf32>
    %c0_13 = arith.constant 0 : index
    %c0_14 = arith.constant 0 : index
    %17 = vector.load %arg7[%c0_13, %c0_14] : memref<64x128xf32, #tpu.memory_space<vmem>>, vector<64x128xf32>
    tpu.vector_store %arg7[%c0_13, %c0_14], %16 {strides = array<i32>} : memref<64x128xf32, #tpu.memory_space<vmem>>, vector<64x128xf32>,
    return
  }
  func.func @transform_0(%arg0: i32) -> (i32, i32) {
    %c0_i32 = arith.constant 0 : i32
    %c0_i32_0 = arith.constant 0 : i32
    %c0_i32_1 = arith.constant 0 : i32
    return %c0_i32, %c0_i32_0 : i32, i32
  }
  func.func @transform_1(%arg0: i32) -> (i32, i32) {
    %c0_i32 = arith.constant 0 : i32
    %c0_i32_0 = arith.constant 0 : i32
    %c0_i32_1 = arith.constant 0 : i32
    return %c0_i32, %c0_i32_0 : i32, i32
  }
  func.func @transform_2(%arg0: i32) -> (i32, i32) {
    %c0_i32 = arith.constant 0 : i32
    %c0_i32_0 = arith.constant 0 : i32
    return %arg0, %c0_i32 : i32, i32
  }
  func.func @transform_3(%arg0: i32) -> (i32, i32) {
    %c0_i32 = arith.constant 0 : i32
    %c0_i32_0 = arith.constant 0 : i32
    %c0_i32_1 = arith.constant 0 : i32
    return %c0_i32, %c0_i32_0 : i32, i32
  }
  func.func @transform_4(%arg0: i32) -> (i32, i32) {
    %c0_i32 = arith.constant 0 : i32
    %c0_i32_0 = arith.constant 0 : i32
    %c0_i32_1 = arith.constant 0 : i32
    return %c0_i32, %c0_i32_0 : i32, i32
  }
  func.func @transform_5(%arg0: i32) -> (i32, i32) {
    %c0_i32 = arith.constant 0 : i32
    %c0_i32_0 = arith.constant 0 : i32
    %c0_i32_1 = arith.constant 0 : i32
    return %c0_i32, %c0_i32_0 : i32, i32
  }
  func.func @transform_6(%arg0: i32) -> (i32, i32) {
    %c0_i32 = arith.constant 0 : i32
    %c0_i32_0 = arith.constant 0 : i32
    return %arg0, %c0_i32 : i32, i32
  }
}

</mosaic_0001>

<bundles_post_ra>
// kernel: tpu_custom_call.1
= control target key start
LH: loop header
LB: loop body
LE: loop exit
PB: predicated region body
PF: predicated region fallthrough
CT: control target
= control target key end

     0   :  { %11 = vsyncpa [#allocation3], 0  ;;  %s1155_s0 = inlined_call_operand.hbm [shape: f32[4,16], index: 0, kind: input, shape index: {}]   ;;  %s1156_s1 = inlined_call_operand.hbm [shape: f32[16,128], index: 1, kind: input, shape index: {}]   ;;  %s1157_s2 = inlined_call_operand.hbm [shape: f32[16,32], index: 2, kind: input, shape index: {}]   ;;  %s1158_s3 = inlined_call_operand.hbm [shape: f32[32,128], index: 3, kind: input, shape index: {}]   ;;  %s1159_s4 = inlined_call_operand.hbm [shape: f32[128,128], index: 4, kind: input, shape index: {}]   ;;  %s1160_s5 = inlined_call_operand.vmem [shape: f32[1,128], index: 5, kind: input, shape index: {}]   ;;  %s1161_s6 = inlined_call_operand.hbm [shape: f32[64,128], index: 6, kind: output, shape index: {}]  }
   0x1   :  { %12 = vsyncpa [#allocation6], 0 }
   0x2   :  { %13 = vsyncpa [#allocation9], 0 }
   0x3   :  { %14 = vsyncpa [#allocation4], 0  ;;  %s988_s21 = smov [#allocation5]   ;;  %s848_s25 = scalar_lea.hbm %s1156_s1, 256 }
   0x4   :  { %s30_s22 = sshll.u32 %s988_s21, 4  ;;  %p849_p0 = scmp.ne.s32.totalorder %s1156_s1, %s848_s25  ;;  %s31_s22 = int_to_ptr.vmem [resolvable:$true] %s30_s22 }
   0x5   :  { %p852_p1 = scmp.lt.u32.totalorder %s848_s25, %s1156_s1 }
   0x7   :  { %p854_p2 = pnand %p852_p1, %p849_p0 }
   0x9   :  { %857 = shalt.err (!%p854_p2)
}
   0xa   :  { %s858_s30 = scalar_lea.vmem %s31_s22, 256  ;;  %p863_p4 = scmp.lt.s32.totalorder %s31_s22, %s31_s22 }
   0xb   :  { %p859_p3 = scmp.ne.s32.totalorder %s31_s22, %s858_s30  ;;  %p864_p5 = scmp.lt.s32.totalorder %s858_s30, %s858_s30 }
   0xd   :  { %p865_p6 = por %p864_p5, %p863_p4 }
   0xf   :  { %p866_p7 = pnand %p865_p6, %p859_p3 }
  0x11   :  { %869 = shalt.err (!%p866_p7)
}
  0x12   :  { %s989_s7 = smov 128   ;;  %s990_s8 = smov 8  }
  0x13   :  { %36 = dma.hbm_to_vmem [thread:$0]  %s1156_s1, 256, %s31_s22, [#allocation6], %s989_s7, %s989_s7, %s990_s8  }
  0x14   :  { %s991_s11 = smov [#allocation8]   ;;  %s992_s13 = smov [#allocation2]  }
  0x15   :  { %s54_s12 = sshll.u32 %s991_s11, 4  ;;  %s21_s14 = sshll.u32 %s992_s13, 4  ;;  %s55_s12 = int_to_ptr.vmem [resolvable:$true] %s54_s12  ;;  %s22_s14 = int_to_ptr.vmem [resolvable:$true] %s21_s14 }
  0x16   :  { %s870_s17 = scalar_lea.hbm %s1158_s3, 512 }
  0x17   :  { %p871_p8 = scmp.ne.s32.totalorder %s1158_s3, %s870_s17  ;;  %p874_p9 = scmp.lt.u32.totalorder %s870_s17, %s1158_s3 }
  0x19   :  { %p876_p10 = pnand %p874_p9, %p871_p8 }
  0x1b   :  { %879 = shalt.err (!%p876_p10)
}
  0x1c   :  { %s880_s1 = scalar_lea.vmem %s55_s12, 512  ;;  %p885_p12 = scmp.lt.s32.totalorder %s55_s12, %s55_s12 }
  0x1d   :  { %p881_p11 = scmp.ne.s32.totalorder %s55_s12, %s880_s1  ;;  %p886_p13 = scmp.lt.s32.totalorder %s880_s1, %s880_s1 }
  0x1f   :  { %p887_p0 = por %p886_p13, %p885_p12 }
  0x21   :  { %p888_p1 = pnand %p887_p0, %p881_p11 }
  0x23   :  { %891 = shalt.err (!%p888_p1)
}
  0x24   :  { %60 = dma.hbm_to_vmem [thread:$0]  %s1158_s3, 512, %s55_s12, [#allocation9], %s989_s7, %s989_s7, %s990_s8  }
  0x25   :  { %s892_s26 = scalar_lea.hbm %s1155_s0, 64 }
  0x26   :  { %p893_p2 = scmp.ne.s32.totalorder %s1155_s0, %s892_s26  ;;  %p896_p3 = scmp.lt.u32.totalorder %s892_s26, %s1155_s0 }
  0x28   :  { %p898_p4 = pnand %p896_p3, %p893_p2 }
  0x2a   :  { %901 = shalt.err (!%p898_p4)
}
  0x2b   :  { %s902_s9 = scalar_lea.vmem %s22_s14, 64  ;;  %p907_p6 = scmp.lt.s32.totalorder %s22_s14, %s22_s14 }
  0x2c   :  { %p903_p5 = scmp.ne.s32.totalorder %s22_s14, %s902_s9  ;;  %p908_p7 = scmp.lt.s32.totalorder %s902_s9, %s902_s9 }
  0x2e   :  { %p909_p8 = por %p908_p7, %p907_p6 }
  0x30   :  { %p910_p9 = pnand %p909_p8, %p903_p5 }
  0x32   :  { %913 = shalt.err (!%p910_p9)
}
  0x33   :  { %24 = dma.hbm_to_vmem [thread:$0]  %s1155_s0, 64, %s22_s14, [#allocation3]  }
  0x34   :  { %s993_s11 = smov [#allocation7]   ;;  %s994_s13 = smov [#allocation10]  }
  0x35   :  { %s42_s12 = sshll.u32 %s993_s11, 4  ;;  %s66_s15 = sshll.u32 %s994_s13, 4  ;;  %s43_s12 = int_to_ptr.vmem [resolvable:$true] %s42_s12  ;;  %s67_s15 = int_to_ptr.vmem [resolvable:$true] %s66_s15 }
  0x36   :  { %s914_s18 = scalar_lea.hbm %s1157_s2, 256 }
  0x37   :  { %p915_p10 = scmp.ne.s32.totalorder %s1157_s2, %s914_s18  ;;  %p918_p11 = scmp.lt.u32.totalorder %s914_s18, %s1157_s2 }
  0x39   :  { %p920_p12 = pnand %p918_p11, %p915_p10 }
  0x3b   :  { %923 = shalt.err (!%p920_p12)
}
  0x3c   :  { %s924_s0 = scalar_lea.vmem %s43_s12, 256  ;;  %p929_p0 = scmp.lt.s32.totalorder %s43_s12, %s43_s12 }
  0x3d   :  { %p925_p13 = scmp.ne.s32.totalorder %s43_s12, %s924_s0  ;;  %p930_p1 = scmp.lt.s32.totalorder %s924_s0, %s924_s0 }
  0x3f   :  { %p931_p2 = por %p930_p1, %p929_p0 }
  0x41   :  { %p932_p3 = pnand %p931_p2, %p925_p13 }
  0x43   :  { %935 = shalt.err (!%p932_p3)
}
  0x44   :  { %48 = dma.hbm_to_vmem [thread:$0]  %s1157_s2, 256, %s43_s12, [#allocation6], %s989_s7, %s989_s7, %s990_s8  }
  0x45   :  { %s936_s25 = scalar_lea.hbm %s1159_s4, 2048 }
  0x46   :  { %p937_p4 = scmp.ne.s32.totalorder %s1159_s4, %s936_s25  ;;  %p940_p5 = scmp.lt.u32.totalorder %s936_s25, %s1159_s4 }
  0x48   :  { %p942_p6 = pnand %p940_p5, %p937_p4 }
  0x4a   :  { %945 = shalt.err (!%p942_p6)
}
  0x4b   :  { %s946_s30 = scalar_lea.vmem %s67_s15, 2048  ;;  %p951_p8 = scmp.lt.s32.totalorder %s67_s15, %s67_s15 }
  0x4c   :  { %p947_p7 = scmp.ne.s32.totalorder %s67_s15, %s946_s30  ;;  %p952_p9 = scmp.lt.s32.totalorder %s946_s30, %s946_s30 }
  0x4e   :  { %p953_p10 = por %p952_p9, %p951_p8 }
  0x50   :  { %p954_p11 = pnand %p953_p10, %p947_p7 }
  0x52   :  { %957 = shalt.err (!%p954_p11)
}
  0x53   :  { %72 = dma.hbm_to_vmem [thread:$0]  %s1159_s4, 2048, %s67_s15, [#allocation9], %s989_s7, %s989_s7, %s990_s8  }
  0x54   :  { %980 = dma.done.wait [#allocation3], 64  }
  0x55   :  { %981 = vsyncadd [#allocation3], 4294967232 }
  0x56   :  { %982 = dma.done.wait [#allocation6], 512  }
  0x57   :  { %983 = vsyncadd [#allocation6], 4294966784 }
  0x58   :  { %984 = dma.done.wait [#allocation9], 2560  }
  0x59   :  { %985 = vsyncadd [#allocation9], 4294964736  ;;  %v995_v0 = vmov 0.0|0.0   ;;  %vm996_vm0 = vmmov 0   ;;  %v997_v1 = vmov 0.0   ;;  %v91_v2 = vld [vmem:[#allocation5] sm:$0xff]  ;;  %v261_v40 = vlaneseq }
  0x5a   :  { %761 = vmatprep.subr.bf16.mxu1 %v995_v0  ;;  %703 = vmatprep.mubr.msk.f32.mxu1 %vm996_vm0, %v997_v1  ;;  %v92_v3 = vld [vmem:[#allocation5 + $0x8] sm:$0xff]  ;;  %v169_v5 = vld [vmem:[#allocation8] sm:$0xff]  ;;  %v171_v7 = vld [vmem:[#allocation8 + $0x10] sm:$0xff]  ;;  %vm93_vm1 = vcmask 130048   ;;  %vm173_vm2 = vcmask 261120   ;;  %vm438_vm3 = vcmask 1043456  }
  0x5b   :  { %v762_v4 = vpack.c.bf16 %v92_v3, %v91_v2  ;;  %v170_v6 = vld [vmem:[#allocation8 + $0x8] sm:$0xff]  ;;  %v172_v9 = vld [vmem:[#allocation8 + $0x18] sm:$0xff]  ;;  %v167_v12 = vld [vmem:[#allocation7] sm:$0xff]  ;;  %v998_v38 = vmov 1966171168   ;;  %v262_v44 = vshrl.u32 %v261_v40, 7 }
  0x5c   :  { %v764_v8 = vpack.c.bf16 %v170_v6, %v169_v5  ;;  %v90_v10 = vld [vmem:[#allocation2] sm:$0xf]  ;;  %v768_v11 = vpack.c.bf16 %v172_v9, %v171_v7  ;;  %v475_v14 = vld [vmem:[#allocation10] sm:$0xff]  ;;  %v476_v15 = vld [vmem:[#allocation10 + $0x8] sm:$0xff]  ;;  %v259_v39 = vunpack.c.l.s4 %v998_v38  ;;  %s999_s10 = smov [#allocation11]  }
  0x5d   :  { %763 = vmatpush3.bf16.msra.mxu1 %v762_v4  ;;  %v168_v13 = vld [vmem:[#allocation7 + $0x8] sm:$0xff]  ;;  %v772_v16 = vpack.c.bf16 %v476_v15, %v475_v14  ;;  %v477_v17 = vld [vmem:[#allocation10 + $0x10] sm:$0xff]  ;;  %v479_v20 = vld [vmem:[#allocation10 + $0x20] sm:$0xff]  ;;  %v1109_v52 = vsub.s32 0, %v262_v44  ;;  %s648_s11 = sshll.u32 %s999_s10, 4  ;;  %s649_s11 = int_to_ptr.vmem [resolvable:$true] %s648_s11 }
  0x5e   :  { %765 = vmatprep.subr.bf16.mxu1 %v764_v8  ;;  %v478_v18 = vld [vmem:[#allocation10 + $0x18] sm:$0xff]  ;;  %v480_v21 = vld [vmem:[#allocation10 + $0x28] sm:$0xff]  ;;  %v481_v23 = vld [vmem:[#allocation10 + $0x30] sm:$0xff]  ;;  %v260_v43 = vunpack.c.0.s8 %v259_v39  ;;  %p963_p13 = scmp.lt.s32.totalorder %s649_s11, %s649_s11 }
  0x5f   :  { %773 = vmatprep.subr.bf16.mxu0 %v772_v16  ;;  %v776_v19 = vpack.c.bf16 %v478_v18, %v477_v17  ;;  %v780_v22 = vpack.c.bf16 %v480_v21, %v479_v20  ;;  %v482_v24 = vld [vmem:[#allocation10 + $0x38] sm:$0xff]  ;;  %v483_v26 = vld [vmem:[#allocation10 + $0x40] sm:$0xff]  ;;  %v484_v27 = vld [vmem:[#allocation10 + $0x48] sm:$0xff] }
  0x60   :  { %704 = vmatmul.mubr.msk.f32.vlgmr.msra.gmra.mrb[0].mxu1 %vm93_vm1, %v90_v10  ;;  %775 = vmatpush3.bf16.msra.mxu0 %v772_v16  ;;  %v784_v25 = vpack.c.bf16 %v482_v24, %v481_v23  ;;  %v788_v28 = vpack.c.bf16 %v484_v27, %v483_v26  ;;  %v485_v29 = vld [vmem:[#allocation10 + $0x50] sm:$0xff]  ;;  %v486_v30 = vld [vmem:[#allocation10 + $0x58] sm:$0xff]  ;;  %v487_v32 = vld [vmem:[#allocation10 + $0x60] sm:$0xff]  ;;  %v263_v46 = vsub.s32 %v260_v43, %v262_v44 }
  0x61   :  { %767 = vmatpush3.bf16.msra.mxu1 %v764_v8  ;;  %714 = vmatprep.mubr.msk.f32.mxu1 %vm173_vm2, %v167_v12  ;;  %v792_v31 = vpack.c.bf16 %v486_v30, %v485_v29  ;;  %v488_v33 = vld [vmem:[#allocation10 + $0x68] sm:$0xff]  ;;  %v489_v34 = vld [vmem:[#allocation10 + $0x70] sm:$0xff]  ;;  %v490_v36 = vld [vmem:[#allocation10 + $0x78] sm:$0xff] }
  0x62   :  { %769 = vmatprep.subr.bf16.mxu1 %v768_v11  ;;  %777 = vmatprep.subr.bf16.mxu0 %v776_v19  ;;  %v796_v35 = vpack.c.bf16 %v488_v33, %v487_v32  ;;  %v800_v37 = vpack.c.bf16 %v490_v36, %v489_v34 }
  0x64   :  { %779 = vmatpush3.bf16.msra.mxu0 %v776_v19 }
  0x65   :  { %771 = vmatpush3.bf16.msra.mxu1 %v768_v11  ;;  %781 = vmatprep.subr.bf16.mxu0 %v780_v22 }
  0x68   :  { %715 = vmatmul.mubr.msk.f32.vlgmr.msra.gmra.mrb[2].mxu1 %vm173_vm2, %v168_v13  ;;  %783 = vmatpush3.bf16.msra.mxu0 %v780_v22 }
  0x69   :  { %785 = vmatprep.subr.bf16.mxu0 %v784_v25 }
  0x6c   :  { %787 = vmatpush3.bf16.msra.mxu0 %v784_v25 }
  0x6d   :  { %789 = vmatprep.subr.bf16.mxu0 %v788_v28 }
  0x70   :  { %791 = vmatpush3.bf16.msra.mxu0 %v788_v28 }
  0x71   :  { %793 = vmatprep.subr.bf16.mxu0 %v792_v31 }
  0x74   :  { %795 = vmatpush3.bf16.msra.mxu0 %v792_v31 }
  0x75   :  { %797 = vmatprep.subr.bf16.mxu0 %v796_v35 }
  0x78   :  { %799 = vmatpush3.bf16.msra.mxu0 %v796_v35 }
  0x79   :  { %801 = vmatprep.subr.bf16.mxu0 %v800_v37 }
  0x7c   :  { %803 = vmatpush3.bf16.msra.mxu0 %v800_v37 }
 0x133   :  { %v163_v41 = vpop.f32.mrb[0].mxu1 }
 0x134   :  { %v705_v42 = vpop.f32.mrb[1].mxu1  ;;  %v436_v45 = vrot.slane %v163_v41, 4 }
 0x136   :  { %v1107_v48 = vsel %vm438_vm3, %v163_v41, %v436_v45 }
 0x137   :  { %v441_v58 = vcombine.high %v1107_v48, %v1107_v48 }
 0x13b   :  { %v716_v47 = vpop.f32.mrb[2].mxu1 }
 0x13c   :  { %v306_v49 = vcombine.high %v716_v47, %v716_v47  ;;  %v313_v50 = vrot.slane %v716_v47, %v263_v46  ;;  %v246_v51 = vpop.f32.mrb[3].mxu1 }
 0x13d   :  { %v257_v53 = vcombine.high %v246_v51, %v246_v51  ;;  %v264_v54 = vrot.slane %v246_v51, %v263_v46 }
 0x13e   :  { %v320_v55 = vrot.slane %v306_v49, %v263_v46  ;;  %v321_v56 = vcombine.high %v313_v50, %v313_v50  ;;  %v329_v57 = vrot.slane %v313_v50, %v263_v46 }
 0x13f   :  { %v271_v59 = vrot.slane %v257_v53, %v263_v46  ;;  %v272_v60 = vcombine.high %v264_v54, %v264_v54  ;;  %v280_v61 = vrot.slane %v264_v54, %v263_v46 }
 0x140   :  { %v322_v62 = vcombine.high %v320_v55, %v320_v55  ;;  %v336_v63 = vrot.slane %v320_v55, %v263_v46  ;;  %v343_v0 = vrot.slane %v321_v56, %v263_v46  ;;  %v351_v1 = vcombine.high %v329_v57, %v329_v57 }
 0x141   :  { %v390_v2 = vrot.slane %v329_v57, %v1109_v52  ;;  %v273_v3 = vcombine.high %v271_v59, %v271_v59  ;;  %v287_v4 = vrot.slane %v271_v59, %v263_v46  ;;  %v294_v5 = vrot.slane %v272_v60, %v263_v46 }
 0x142   :  { %v350_v6 = vrot.slane %v322_v62, %v263_v46  ;;  %v352_v7 = vcombine.high %v336_v63, %v336_v63  ;;  %v353_v8 = vcombine.high %v343_v0, %v343_v0  ;;  %v394_v9 = vrot.slane %v343_v0, %v1109_v52 }
 0x143   :  { %v398_v10 = vrot.slane %v351_v1, %v1109_v52  ;;  %v406_v11 = vrot.slane %v336_v63, %v1109_v52  ;;  %v451_v12 = vmul.f32 %v1107_v48, %v390_v2  ;;  %v301_v13 = vrot.slane %v273_v3, %v263_v46 }
 0x144   :  { %v354_v14 = vcombine.high %v350_v6, %v350_v6  ;;  %v402_v15 = vrot.slane %v353_v8, %v1109_v52  ;;  %v410_v16 = vrot.slane %v350_v6, %v1109_v52  ;;  %v414_v17 = vrot.slane %v352_v7, %v1109_v52  ;;  %v665_v6 = vld [vmem:[%s1160_s5] ss:$0 sm:$0xff]  ;;  %s958_s5 = scalar_lea.vmem %s649_s11, 1024 }
 0x145   :  { %v452_v18 = vmul.f32 %v441_v58, %v394_v9  ;;  %v453_v19 = vmul.f32 %v1107_v48, %v398_v10  ;;  %v455_v20 = vmul.f32 %v1107_v48, %v406_v11  ;;  %816 = vtanh.f32 %v451_v12  ;;  %p959_p12 = scmp.ne.s32.totalorder %s649_s11, %s958_s5  ;;  %p964_p0 = scmp.lt.s32.totalorder %s958_s5, %s958_s5 }
 0x146   :  { %v418_v21 = vrot.slane %v354_v14, %v1109_v52  ;;  %v454_v22 = vmul.f32 %v441_v58, %v402_v15  ;;  %v456_v23 = vmul.f32 %v441_v58, %v410_v16  ;;  %v457_v24 = vmul.f32 %v1107_v48, %v414_v17 }
 0x147   :  { %818 = vtanh.f32 %v452_v18  ;;  %v302_v25 = vcombine.high %v280_v61, %v280_v61  ;;  %v303_v26 = vcombine.high %v287_v4, %v287_v4  ;;  %v304_v27 = vcombine.high %v294_v5, %v294_v5  ;;  %p965_p1 = por %p964_p0, %p963_p13 }
 0x148   :  { %v458_v28 = vmul.f32 %v441_v58, %v418_v21  ;;  %820 = vtanh.f32 %v453_v19  ;;  %v305_v29 = vcombine.high %v301_v13, %v301_v13  ;;  %v358_v30 = vrot.slane %v280_v61, %v1109_v52 }
 0x149   :  { %822 = vtanh.f32 %v454_v22  ;;  %v362_v31 = vrot.slane %v294_v5, %v1109_v52  ;;  %v366_v32 = vrot.slane %v302_v25, %v1109_v52  ;;  %v370_v33 = vrot.slane %v304_v27, %v1109_v52  ;;  %p966_p2 = pnand %p965_p1, %p959_p12 }
 0x14a   :  { %824 = vtanh.f32 %v455_v20  ;;  %v374_v34 = vrot.slane %v287_v4, %v1109_v52  ;;  %v378_v35 = vrot.slane %v301_v13, %v1109_v52  ;;  %v382_v36 = vrot.slane %v303_v26, %v1109_v52 }
 0x14b   :  { %826 = vtanh.f32 %v456_v23  ;;  %v386_v37 = vrot.slane %v305_v29, %v1109_v52  ;;  %v443_v38 = vmul.f32 %v1107_v48, %v358_v30  ;;  %v444_v39 = vmul.f32 %v441_v58, %v362_v31 }
 0x14c   :  { %828 = vtanh.f32 %v457_v24  ;;  %v445_v40 = vmul.f32 %v1107_v48, %v366_v32  ;;  %v446_v41 = vmul.f32 %v441_v58, %v370_v33  ;;  %v447_v42 = vmul.f32 %v1107_v48, %v374_v34 }
 0x14d   :  { %830 = vtanh.f32 %v458_v28  ;;  %v448_v43 = vmul.f32 %v441_v58, %v378_v35  ;;  %v449_v44 = vmul.f32 %v1107_v48, %v382_v36  ;;  %v450_v45 = vmul.f32 %v441_v58, %v386_v37 }
 0x14e   :  { %832 = vtanh.f32 %v443_v38 }
 0x14f   :  { %v817_v46 = vpop.eup %816  ;;  %834 = vtanh.f32 %v444_v39 }
 0x150   :  { %836 = vtanh.f32 %v445_v40 }
 0x151   :  { %v819_v47 = vpop.eup %818  ;;  %838 = vtanh.f32 %v446_v41 }
 0x152   :  { %v821_v49 = vpop.eup %820  ;;  %840 = vtanh.f32 %v447_v42  ;;  %v518_v50 = vcombine.low %v817_v46, %v819_v47 }
 0x153   :  { %v823_v51 = vpop.eup %822  ;;  %842 = vtanh.f32 %v448_v43 }
 0x154   :  { %v825_v52 = vpop.eup %824  ;;  %844 = vtanh.f32 %v449_v44  ;;  %v519_v53 = vcombine.low %v821_v49, %v823_v51 }
 0x155   :  { %v827_v54 = vpop.eup %826  ;;  %846 = vtanh.f32 %v450_v45 }
 0x156   :  { %v829_v55 = vpop.eup %828  ;;  %v520_v56 = vcombine.low %v825_v52, %v827_v54 }
 0x157   :  { %v831_v48 = vpop.eup %830 }
 0x158   :  { %v833_v57 = vpop.eup %832  ;;  %v521_v58 = vcombine.low %v829_v55, %v831_v48 }
 0x159   :  { %v835_v59 = vpop.eup %834 }
 0x15a   :  { %v837_v60 = vpop.eup %836  ;;  %v514_v61 = vcombine.low %v833_v57, %v835_v59 }
 0x15b   :  { %v839_v62 = vpop.eup %838 }
 0x15c   :  { %v841_v63 = vpop.eup %840  ;;  %749 = vmatprep.mubr.f32.mxu0 %v514_v61  ;;  %v515_v0 = vcombine.low %v837_v60, %v839_v62 }
 0x15d   :  { %v843_v1 = vpop.eup %842 }
 0x15e   :  { %v845_v2 = vpop.eup %844  ;;  %750 = vmatmul.mubr.f32.vlgmr.msra.gmra.mrb[0].mxu0 %v515_v0  ;;  %v516_v3 = vcombine.low %v841_v63, %v843_v1 }
 0x15f   :  { %v847_v4 = vpop.eup %846 }
 0x160   :  { %752 = vmatprep.mubr.f32.mxu0 %v516_v3  ;;  %v517_v5 = vcombine.low %v845_v2, %v847_v4 }
 0x162   :  { %753 = vmatmul.mubr.f32.gmra.mrb[2].mxu0 %v517_v5 }
 0x163   :  { %755 = vmatprep.mubr.f32.mxu0 %v518_v50 }
 0x166   :  { %756 = vmatmul.mubr.f32.gmra.mrb[4].mxu0 %v519_v53 }
 0x167   :  { %758 = vmatprep.mubr.f32.mxu0 %v520_v56 }
 0x16a   :  { %759 = vmatmul.mubr.f32.gmra.mrb[6].mxu0 %v521_v58 }
 0x231   :  { %v751_v7 = vpop.f32.mrb[0].mxu0 }
 0x232   :  { %v602_v8 = vadd.f32 %v751_v7, %v665_v6  ;;  %v596_v9 = vpop.f32.mrb[1].mxu0 }
 0x233   :  { %v597_v10 = vadd.f32 %v665_v6, %v596_v9 }
 0x234   :  { %636 = vst [vmem:[#allocation11 + $0x8] sm:$0xff] %v602_v8 }
 0x235   :  { %635 = vst [vmem:[#allocation11] sm:$0xff] %v597_v10  ;;  %v754_v11 = vpop.f32.mrb[2].mxu0 }
 0x236   :  { %v612_v12 = vadd.f32 %v754_v11, %v665_v6  ;;  %v606_v13 = vpop.f32.mrb[3].mxu0 }
 0x237   :  { %v607_v14 = vadd.f32 %v665_v6, %v606_v13 }
 0x238   :  { %638 = vst [vmem:[#allocation11 + $0x18] sm:$0xff] %v612_v12 }
 0x239   :  { %637 = vst [vmem:[#allocation11 + $0x10] sm:$0xff] %v607_v14  ;;  %v757_v15 = vpop.f32.mrb[4].mxu0 }
 0x23a   :  { %v622_v16 = vadd.f32 %v757_v15, %v665_v6  ;;  %v616_v17 = vpop.f32.mrb[5].mxu0 }
 0x23b   :  { %v617_v18 = vadd.f32 %v665_v6, %v616_v17 }
 0x23c   :  { %640 = vst [vmem:[#allocation11 + $0x28] sm:$0xff] %v622_v16 }
 0x23d   :  { %639 = vst [vmem:[#allocation11 + $0x20] sm:$0xff] %v617_v18  ;;  %v760_v19 = vpop.f32.mrb[6].mxu0 }
 0x23e   :  { %v632_v20 = vadd.f32 %v760_v19, %v665_v6  ;;  %v626_v21 = vpop.f32.mrb[7].mxu0 }
 0x23f   :  { %v627_v22 = vadd.f32 %v665_v6, %v626_v21 }
 0x240   :  { %642 = vst [vmem:[#allocation11 + $0x38] sm:$0xff] %v632_v20 }
 0x241   :  { %641 = vst [vmem:[#allocation11 + $0x30] sm:$0xff] %v627_v22 }
 0x242   :  { %969 = shalt.err (!%p966_p2)
}
 0x243   :  { %s970_s15 = scalar_lea.hbm %s1161_s6, 1024 }
 0x244   :  { %p971_p3 = scmp.ne.s32.totalorder %s1161_s6, %s970_s15  ;;  %p974_p4 = scmp.lt.u32.totalorder %s970_s15, %s1161_s6 }
 0x246   :  { %p976_p5 = pnand %p974_p4, %p971_p3 }
 0x248   :  { %979 = shalt.err (!%p976_p5)
}
 0x249   :  { %654 = dma.vmem_to_hbm [thread:$0]  %s649_s11, 1024, %s1161_s6, [#allocation4], %s989_s7, %s989_s7, %s990_s8  }
 0x24a   :  { %986 = dma.done.wait [#allocation4], 1024  }
 0x24b   :  { %987 = vsyncadd [#allocation4], 4294966272 }
 0x24c   :  { %658 = vsyncpa [#allocation3], 1 }
 0x24d   :  { %659 = vsyncpa [#allocation6], 1 }
 0x24e   :  { %660 = vsyncpa [#allocation9], 1 }
 0x24f   :  { %661 = vsyncpa [#allocation4], 1 }

</bundles_post_ra>
